<compile_context>
chip_gen: v5e
topology: v5e:2x2
jax: 0.10.0
libtpu: 0.0.40
codegen_flags: <defaults>
</compile_context>

<pallas_src>
import functools

import jax
import jax.numpy as jnp
from jax.experimental import pallas as pl
from jax.experimental.pallas import tpu as pltpu


def _residual_conv1x1_kernel(x_ref, w_ref, b_ref, o_ref, *, C, ROWS, CHUNK):
    # x_ref: (C, ROWS, 128)  VMEM   spatial tile of one batch element
    # w_ref: (C, C)          SMEM   f32, already (W + I)  (PyTorch (C_out, C_in) order)
    # b_ref: (C,)            SMEM   f32 bias
    # o_ref: (C, ROWS, 128)  VMEM   output tile
    #
    # Static chunking over the sublane (row) axis keeps the live working set to a
    # handful of vregs per value even for 1 MiB blocks; all indices are static so
    # slicing is a zero-cost view of the VMEM ref.
    for lo in range(0, ROWS, CHUNK):
        sz = min(CHUNK, ROWS - lo)
        for co in range(C):
            # Unrolled VPU broadcast-FMA chain over the tiny channel contraction.
            acc = w_ref[co, 0] * x_ref[0, lo:lo + sz, :].astype(jnp.float32)
            for ci in range(1, C):
                acc = acc + w_ref[co, ci] * x_ref[ci, lo:lo + sz, :].astype(jnp.float32)
            acc = acc + b_ref[co]
            o_ref[co, lo:lo + sz, :] = acc.astype(o_ref.dtype)


def residual_add_conv1x1(x_nchw, weight, bias, *, max_rows=512, chunk_rows=64):
    """y = Conv2d(C, C, kernel_size=1, bias=True)(x) + x,  x in NCHW.

    max_rows:   sublane rows (of 128 lanes each) per grid block; 512 rows * C=4
                channels * 4 B = 1 MiB/block -> ~85%+ of HBM roofline, well under
                the default scoped-VMEM limit even with double buffering.
    chunk_rows: rows processed per inner compute step (register-pressure bound).
    """
    N, C, H, W = x_nchw.shape
    HW = H * W
    LANE = 128

    # Tile the spatial axis as (rows, 128): lane-dense, full sublane packing.
    hw_lane_pad = pl.cdiv(HW, LANE) * LANE
    rows_total = hw_lane_pad // LANE
    ROWS = min(max_rows, rows_total)              # == full dim, or a multiple of 8
    n_row_tiles = pl.cdiv(rows_total, ROWS)
    rows_padded = n_row_tiles * ROWS
    hw_padded = rows_padded * LANE

    x3 = x_nchw.reshape(N, C, HW)                 # pure view, no transpose
    if hw_padded != HW:
        x3 = jnp.pad(x3, ((0, 0), (0, 0), (0, hw_padded - HW)))
    x4 = x3.reshape(N, C, rows_padded, LANE)      # pure view

    # Fold the identity residual into the 1x1-conv weight: y = (W + I) x + b.
    w_eff = (weight.reshape(C, C) + jnp.eye(C, dtype=weight.dtype)).astype(jnp.float32)
    b = bias.reshape(C).astype(jnp.float32)

    CHUNK = min(chunk_rows, ROWS)
    kernel = functools.partial(_residual_conv1x1_kernel, C=C, ROWS=ROWS, CHUNK=CHUNK)

    out4 = pl.pallas_call(
        kernel,
        out_shape=jax.ShapeDtypeStruct((N, C, rows_padded, LANE), x_nchw.dtype),
        grid_spec=pltpu.PrefetchScalarGridSpec(
            num_scalar_prefetch=0,
            grid=(N, n_row_tiles),
            in_specs=[
                # x block: squeeze batch, all channels, ROWS x 128 spatial slab.
                pl.BlockSpec((None, C, ROWS, LANE), lambda n, j: (n, 0, j, 0)),
                # Tiny weight / bias stay in SMEM (scalar reads feed the FMAs),
                # out of the per-step pipelined VMEM DMA path.
                pl.BlockSpec(memory_space=pltpu.MemorySpace.SMEM),
                pl.BlockSpec(memory_space=pltpu.MemorySpace.SMEM),
            ],
            out_specs=pl.BlockSpec((None, C, ROWS, LANE), lambda n, j: (n, 0, j, 0)),
        ),
        compiler_params=pltpu.CompilerParams(
            dimension_semantics=("parallel", "parallel"),
        ),
    )(x4, w_eff, b)

    out3 = out4.reshape(N, C, hw_padded)
    if hw_padded != HW:
        out3 = out3[:, :, :HW]
    return out3.reshape(N, C, H, W)


if __name__ == "__main__":
    key = jax.random.PRNGKey(0)
    kx, kw, kb = jax.random.split(key, 3)

    N, C, H, W = 2, 4, 16, 16
    x = jax.random.normal(kx, (N, C, H, W), dtype=jnp.float32)
    # Deterministic synthetic parameters for the 1x1-conv block.
    weight = jax.random.normal(kw, (C, C, 1, 1), dtype=jnp.float32) * 0.1
    bias = jax.random.normal(kb, (C,), dtype=jnp.float32) * 0.1

    out = residual_add_conv1x1(x, weight, bias)
    out = jax.block_until_ready(out)

    # Pure-JAX reference: 1x1 conv (NCHW) + identity residual.
    w2 = weight.reshape(C, C)  # (C_out, C_in)
    ref = jnp.einsum("nchw,oc->nohw", x, w2) + bias.reshape(1, C, 1, 1) + x

    assert out.shape == (N, C, H, W)
    assert out.dtype == x.dtype
    assert jnp.allclose(out, ref, atol=1e-5, rtol=1e-5), "mismatch vs reference"
    print("KERNEL_OK")
</pallas_src>

<mosaic_0001>
module attributes {stable_mosaic.version = 11 : i64} {
  func.func @_residual_conv1x1_kernel(%arg0: i32, %arg1: i32, %arg2: memref<1x4x2x128xf32, #tpu.memory_space<vmem>>, %arg3: memref<4x4xf32, #tpu.memory_space<smem>>, %arg4: memref<4xf32, #tpu.memory_space<smem>>, %arg5: memref<1x4x2x128xf32, #tpu.memory_space<vmem>>) attributes {dimension_semantics = [#tpu.dimension_semantics<parallel>, #tpu.dimension_semantics<parallel>], iteration_bounds = array<i64: 2, 1>, scalar_prefetch = 0 : i64, scratch_operands = 0 : i64, tpu.core_type = #tpu.core_type<tc>, window_params = [{transform_indices = @transform_0, window_bounds = array<i64: 1, 4, 2, 128>}, {transform_indices = @transform_1, window_bounds = array<i64: 4, 4>}, {transform_indices = @transform_2, window_bounds = array<i64: 4>}, {transform_indices = @transform_3, window_bounds = array<i64: 1, 4, 2, 128>}]} {
    %c0 = arith.constant 0 : index
    %c0_0 = arith.constant 0 : index
    %0 = memref.load %arg3[%c0, %c0_0] : memref<4x4xf32, #tpu.memory_space<smem>>
    %c0_1 = arith.constant 0 : index
    %c0_2 = arith.constant 0 : index
    %c0_3 = arith.constant 0 : index
    %c0_4 = arith.constant 0 : index
    %1 = vector.load %arg2[%c0_1, %c0_2, %c0_3, %c0_4] : memref<1x4x2x128xf32, #tpu.memory_space<vmem>>, vector<1x1x2x128xf32>
    %2 = vector.shape_cast %1 : vector<1x1x2x128xf32> to vector<2x128xf32>
    %3 = vector.broadcast %0 : f32 to vector<2x128xf32>
    %4 = arith.mulf %3, %2 : vector<2x128xf32>
    %c0_5 = arith.constant 0 : index
    %c1 = arith.constant 1 : index
    %5 = memref.load %arg3[%c0_5, %c1] : memref<4x4xf32, #tpu.memory_space<smem>>
    %c0_6 = arith.constant 0 : index
    %c1_7 = arith.constant 1 : index
    %c0_8 = arith.constant 0 : index
    %c0_9 = arith.constant 0 : index
    %6 = vector.load %arg2[%c0_6, %c1_7, %c0_8, %c0_9] : memref<1x4x2x128xf32, #tpu.memory_space<vmem>>, vector<1x1x2x128xf32>
    %7 = vector.shape_cast %6 : vector<1x1x2x128xf32> to vector<2x128xf32>
    %8 = vector.broadcast %5 : f32 to vector<2x128xf32>
    %9 = arith.mulf %8, %7 : vector<2x128xf32>
    %10 = arith.addf %4, %9 : vector<2x128xf32>
    %c0_10 = arith.constant 0 : index
    %c2 = arith.constant 2 : index
    %11 = memref.load %arg3[%c0_10, %c2] : memref<4x4xf32, #tpu.memory_space<smem>>
    %c0_11 = arith.constant 0 : index
    %c2_12 = arith.constant 2 : index
    %c0_13 = arith.constant 0 : index
    %c0_14 = arith.constant 0 : index
    %12 = vector.load %arg2[%c0_11, %c2_12, %c0_13, %c0_14] : memref<1x4x2x128xf32, #tpu.memory_space<vmem>>, vector<1x1x2x128xf32>
    %13 = vector.shape_cast %12 : vector<1x1x2x128xf32> to vector<2x128xf32>
    %14 = vector.broadcast %11 : f32 to vector<2x128xf32>
    %15 = arith.mulf %14, %13 : vector<2x128xf32>
    %16 = arith.addf %10, %15 : vector<2x128xf32>
    %c0_15 = arith.constant 0 : index
    %c3 = arith.constant 3 : index
    %17 = memref.load %arg3[%c0_15, %c3] : memref<4x4xf32, #tpu.memory_space<smem>>
    %c0_16 = arith.constant 0 : index
    %c3_17 = arith.constant 3 : index
    %c0_18 = arith.constant 0 : index
    %c0_19 = arith.constant 0 : index
    %18 = vector.load %arg2[%c0_16, %c3_17, %c0_18, %c0_19] : memref<1x4x2x128xf32, #tpu.memory_space<vmem>>, vector<1x1x2x128xf32>
    %19 = vector.shape_cast %18 : vector<1x1x2x128xf32> to vector<2x128xf32>
    %20 = vector.broadcast %17 : f32 to vector<2x128xf32>
    %21 = arith.mulf %20, %19 : vector<2x128xf32>
    %22 = arith.addf %16, %21 : vector<2x128xf32>
    %c0_20 = arith.constant 0 : index
    %23 = memref.load %arg4[%c0_20] : memref<4xf32, #tpu.memory_space<smem>>
    %24 = vector.broadcast %23 : f32 to vector<2x128xf32>
    %25 = arith.addf %22, %24 : vector<2x128xf32>
    %c0_21 = arith.constant 0 : index
    %c0_22 = arith.constant 0 : index
    %c0_23 = arith.constant 0 : index
    %c0_24 = arith.constant 0 : index
    %26 = vector.load %arg5[%c0_21, %c0_22, %c0_23, %c0_24] : memref<1x4x2x128xf32, #tpu.memory_space<vmem>>, vector<1x1x2x128xf32>
    %27 = vector.shape_cast %26 : vector<1x1x2x128xf32> to vector<2x128xf32>
    %28 = vector.shape_cast %25 : vector<2x128xf32> to vector<1x1x2x128xf32>
    tpu.vector_store %arg5[%c0_21, %c0_22, %c0_23, %c0_24], %28 {strides = array<i32>} : memref<1x4x2x128xf32, #tpu.memory_space<vmem>>, vector<1x1x2x128xf32>,
    %c1_25 = arith.constant 1 : index
    %c0_26 = arith.constant 0 : index
    %29 = memref.load %arg3[%c1_25, %c0_26] : memref<4x4xf32, #tpu.memory_space<smem>>
    %c0_27 = arith.constant 0 : index
    %c0_28 = arith.constant 0 : index
    %c0_29 = arith.constant 0 : index
    %c0_30 = arith.constant 0 : index
    %30 = vector.load %arg2[%c0_27, %c0_28, %c0_29, %c0_30] : memref<1x4x2x128xf32, #tpu.memory_space<vmem>>, vector<1x1x2x128xf32>
    %31 = vector.shape_cast %30 : vector<1x1x2x128xf32> to vector<2x128xf32>
    %32 = vector.broadcast %29 : f32 to vector<2x128xf32>
    %33 = arith.mulf %32, %31 : vector<2x128xf32>
    %c1_31 = arith.constant 1 : index
    %c1_32 = arith.constant 1 : index
    %34 = memref.load %arg3[%c1_31, %c1_32] : memref<4x4xf32, #tpu.memory_space<smem>>
    %c0_33 = arith.constant 0 : index
    %c1_34 = arith.constant 1 : index
    %c0_35 = arith.constant 0 : index
    %c0_36 = arith.constant 0 : index
    %35 = vector.load %arg2[%c0_33, %c1_34, %c0_35, %c0_36] : memref<1x4x2x128xf32, #tpu.memory_space<vmem>>, vector<1x1x2x128xf32>
    %36 = vector.shape_cast %35 : vector<1x1x2x128xf32> to vector<2x128xf32>
    %37 = vector.broadcast %34 : f32 to vector<2x128xf32>
    %38 = arith.mulf %37, %36 : vector<2x128xf32>
    %39 = arith.addf %33, %38 : vector<2x128xf32>
    %c1_37 = arith.constant 1 : index
    %c2_38 = arith.constant 2 : index
    %40 = memref.load %arg3[%c1_37, %c2_38] : memref<4x4xf32, #tpu.memory_space<smem>>
    %c0_39 = arith.constant 0 : index
    %c2_40 = arith.constant 2 : index
    %c0_41 = arith.constant 0 : index
    %c0_42 = arith.constant 0 : index
    %41 = vector.load %arg2[%c0_39, %c2_40, %c0_41, %c0_42] : memref<1x4x2x128xf32, #tpu.memory_space<vmem>>, vector<1x1x2x128xf32>
    %42 = vector.shape_cast %41 : vector<1x1x2x128xf32> to vector<2x128xf32>
    %43 = vector.broadcast %40 : f32 to vector<2x128xf32>
    %44 = arith.mulf %43, %42 : vector<2x128xf32>
    %45 = arith.addf %39, %44 : vector<2x128xf32>
    %c1_43 = arith.constant 1 : index
    %c3_44 = arith.constant 3 : index
    %46 = memref.load %arg3[%c1_43, %c3_44] : memref<4x4xf32, #tpu.memory_space<smem>>
    %c0_45 = arith.constant 0 : index
    %c3_46 = arith.constant 3 : index
    %c0_47 = arith.constant 0 : index
    %c0_48 = arith.constant 0 : index
    %47 = vector.load %arg2[%c0_45, %c3_46, %c0_47, %c0_48] : memref<1x4x2x128xf32, #tpu.memory_space<vmem>>, vector<1x1x2x128xf32>
    %48 = vector.shape_cast %47 : vector<1x1x2x128xf32> to vector<2x128xf32>
    %49 = vector.broadcast %46 : f32 to vector<2x128xf32>
    %50 = arith.mulf %49, %48 : vector<2x128xf32>
    %51 = arith.addf %45, %50 : vector<2x128xf32>
    %c1_49 = arith.constant 1 : index
    %52 = memref.load %arg4[%c1_49] : memref<4xf32, #tpu.memory_space<smem>>
    %53 = vector.broadcast %52 : f32 to vector<2x128xf32>
    %54 = arith.addf %51, %53 : vector<2x128xf32>
    %c0_50 = arith.constant 0 : index
    %c1_51 = arith.constant 1 : index
    %c0_52 = arith.constant 0 : index
    %c0_53 = arith.constant 0 : index
    %55 = vector.load %arg5[%c0_50, %c1_51, %c0_52, %c0_53] : memref<1x4x2x128xf32, #tpu.memory_space<vmem>>, vector<1x1x2x128xf32>
    %56 = vector.shape_cast %55 : vector<1x1x2x128xf32> to vector<2x128xf32>
    %57 = vector.shape_cast %54 : vector<2x128xf32> to vector<1x1x2x128xf32>
    tpu.vector_store %arg5[%c0_50, %c1_51, %c0_52, %c0_53], %57 {strides = array<i32>} : memref<1x4x2x128xf32, #tpu.memory_space<vmem>>, vector<1x1x2x128xf32>,
    %c2_54 = arith.constant 2 : index
    %c0_55 = arith.constant 0 : index
    %58 = memref.load %arg3[%c2_54, %c0_55] : memref<4x4xf32, #tpu.memory_space<smem>>
    %c0_56 = arith.constant 0 : index
    %c0_57 = arith.constant 0 : index
    %c0_58 = arith.constant 0 : index
    %c0_59 = arith.constant 0 : index
    %59 = vector.load %arg2[%c0_56, %c0_57, %c0_58, %c0_59] : memref<1x4x2x128xf32, #tpu.memory_space<vmem>>, vector<1x1x2x128xf32>
    %60 = vector.shape_cast %59 : vector<1x1x2x128xf32> to vector<2x128xf32>
    %61 = vector.broadcast %58 : f32 to vector<2x128xf32>
    %62 = arith.mulf %61, %60 : vector<2x128xf32>
    %c2_60 = arith.constant 2 : index
    %c1_61 = arith.constant 1 : index
    %63 = memref.load %arg3[%c2_60, %c1_61] : memref<4x4xf32, #tpu.memory_space<smem>>
    %c0_62 = arith.constant 0 : index
    %c1_63 = arith.constant 1 : index
    %c0_64 = arith.constant 0 : index
    %c0_65 = arith.constant 0 : index
    %64 = vector.load %arg2[%c0_62, %c1_63, %c0_64, %c0_65] : memref<1x4x2x128xf32, #tpu.memory_space<vmem>>, vector<1x1x2x128xf32>
    %65 = vector.shape_cast %64 : vector<1x1x2x128xf32> to vector<2x128xf32>
    %66 = vector.broadcast %63 : f32 to vector<2x128xf32>
    %67 = arith.mulf %66, %65 : vector<2x128xf32>
    %68 = arith.addf %62, %67 : vector<2x128xf32>
    %c2_66 = arith.constant 2 : index
    %c2_67 = arith.constant 2 : index
    %69 = memref.load %arg3[%c2_66, %c2_67] : memref<4x4xf32, #tpu.memory_space<smem>>
    %c0_68 = arith.constant 0 : index
    %c2_69 = arith.constant 2 : index
    %c0_70 = arith.constant 0 : index
    %c0_71 = arith.constant 0 : index
    %70 = vector.load %arg2[%c0_68, %c2_69, %c0_70, %c0_71] : memref<1x4x2x128xf32, #tpu.memory_space<vmem>>, vector<1x1x2x128xf32>
    %71 = vector.shape_cast %70 : vector<1x1x2x128xf32> to vector<2x128xf32>
    %72 = vector.broadcast %69 : f32 to vector<2x128xf32>
    %73 = arith.mulf %72, %71 : vector<2x128xf32>
    %74 = arith.addf %68, %73 : vector<2x128xf32>
    %c2_72 = arith.constant 2 : index
    %c3_73 = arith.constant 3 : index
    %75 = memref.load %arg3[%c2_72, %c3_73] : memref<4x4xf32, #tpu.memory_space<smem>>
    %c0_74 = arith.constant 0 : index
    %c3_75 = arith.constant 3 : index
    %c0_76 = arith.constant 0 : index
    %c0_77 = arith.constant 0 : index
    %76 = vector.load %arg2[%c0_74, %c3_75, %c0_76, %c0_77] : memref<1x4x2x128xf32, #tpu.memory_space<vmem>>, vector<1x1x2x128xf32>
    %77 = vector.shape_cast %76 : vector<1x1x2x128xf32> to vector<2x128xf32>
    %78 = vector.broadcast %75 : f32 to vector<2x128xf32>
    %79 = arith.mulf %78, %77 : vector<2x128xf32>
    %80 = arith.addf %74, %79 : vector<2x128xf32>
    %c2_78 = arith.constant 2 : index
    %81 = memref.load %arg4[%c2_78] : memref<4xf32, #tpu.memory_space<smem>>
    %82 = vector.broadcast %81 : f32 to vector<2x128xf32>
    %83 = arith.addf %80, %82 : vector<2x128xf32>
    %c0_79 = arith.constant 0 : index
    %c2_80 = arith.constant 2 : index
    %c0_81 = arith.constant 0 : index
    %c0_82 = arith.constant 0 : index
    %84 = vector.load %arg5[%c0_79, %c2_80, %c0_81, %c0_82] : memref<1x4x2x128xf32, #tpu.memory_space<vmem>>, vector<1x1x2x128xf32>
    %85 = vector.shape_cast %84 : vector<1x1x2x128xf32> to vector<2x128xf32>
    %86 = vector.shape_cast %83 : vector<2x128xf32> to vector<1x1x2x128xf32>
    tpu.vector_store %arg5[%c0_79, %c2_80, %c0_81, %c0_82], %86 {strides = array<i32>} : memref<1x4x2x128xf32, #tpu.memory_space<vmem>>, vector<1x1x2x128xf32>,
    %c3_83 = arith.constant 3 : index
    %c0_84 = arith.constant 0 : index
    %87 = memref.load %arg3[%c3_83, %c0_84] : memref<4x4xf32, #tpu.memory_space<smem>>
    %c0_85 = arith.constant 0 : index
    %c0_86 = arith.constant 0 : index
    %c0_87 = arith.constant 0 : index
    %c0_88 = arith.constant 0 : index
    %88 = vector.load %arg2[%c0_85, %c0_86, %c0_87, %c0_88] : memref<1x4x2x128xf32, #tpu.memory_space<vmem>>, vector<1x1x2x128xf32>
    %89 = vector.shape_cast %88 : vector<1x1x2x128xf32> to vector<2x128xf32>
    %90 = vector.broadcast %87 : f32 to vector<2x128xf32>
    %91 = arith.mulf %90, %89 : vector<2x128xf32>
    %c3_89 = arith.constant 3 : index
    %c1_90 = arith.constant 1 : index
    %92 = memref.load %arg3[%c3_89, %c1_90] : memref<4x4xf32, #tpu.memory_space<smem>>
    %c0_91 = arith.constant 0 : index
    %c1_92 = arith.constant 1 : index
    %c0_93 = arith.constant 0 : index
    %c0_94 = arith.constant 0 : index
    %93 = vector.load %arg2[%c0_91, %c1_92, %c0_93, %c0_94] : memref<1x4x2x128xf32, #tpu.memory_space<vmem>>, vector<1x1x2x128xf32>
    %94 = vector.shape_cast %93 : vector<1x1x2x128xf32> to vector<2x128xf32>
    %95 = vector.broadcast %92 : f32 to vector<2x128xf32>
    %96 = arith.mulf %95, %94 : vector<2x128xf32>
    %97 = arith.addf %91, %96 : vector<2x128xf32>
    %c3_95 = arith.constant 3 : index
    %c2_96 = arith.constant 2 : index
    %98 = memref.load %arg3[%c3_95, %c2_96] : memref<4x4xf32, #tpu.memory_space<smem>>
    %c0_97 = arith.constant 0 : index
    %c2_98 = arith.constant 2 : index
    %c0_99 = arith.constant 0 : index
    %c0_100 = arith.constant 0 : index
    %99 = vector.load %arg2[%c0_97, %c2_98, %c0_99, %c0_100] : memref<1x4x2x128xf32, #tpu.memory_space<vmem>>, vector<1x1x2x128xf32>
    %100 = vector.shape_cast %99 : vector<1x1x2x128xf32> to vector<2x128xf32>
    %101 = vector.broadcast %98 : f32 to vector<2x128xf32>
    %102 = arith.mulf %101, %100 : vector<2x128xf32>
    %103 = arith.addf %97, %102 : vector<2x128xf32>
    %c3_101 = arith.constant 3 : index
    %c3_102 = arith.constant 3 : index
    %104 = memref.load %arg3[%c3_101, %c3_102] : memref<4x4xf32, #tpu.memory_space<smem>>
    %c0_103 = arith.constant 0 : index
    %c3_104 = arith.constant 3 : index
    %c0_105 = arith.constant 0 : index
    %c0_106 = arith.constant 0 : index
    %105 = vector.load %arg2[%c0_103, %c3_104, %c0_105, %c0_106] : memref<1x4x2x128xf32, #tpu.memory_space<vmem>>, vector<1x1x2x128xf32>
    %106 = vector.shape_cast %105 : vector<1x1x2x128xf32> to vector<2x128xf32>
    %107 = vector.broadcast %104 : f32 to vector<2x128xf32>
    %108 = arith.mulf %107, %106 : vector<2x128xf32>
    %109 = arith.addf %103, %108 : vector<2x128xf32>
    %c3_107 = arith.constant 3 : index
    %110 = memref.load %arg4[%c3_107] : memref<4xf32, #tpu.memory_space<smem>>
    %111 = vector.broadcast %110 : f32 to vector<2x128xf32>
    %112 = arith.addf %109, %111 : vector<2x128xf32>
    %c0_108 = arith.constant 0 : index
    %c3_109 = arith.constant 3 : index
    %c0_110 = arith.constant 0 : index
    %c0_111 = arith.constant 0 : index
    %113 = vector.load %arg5[%c0_108, %c3_109, %c0_110, %c0_111] : memref<1x4x2x128xf32, #tpu.memory_space<vmem>>, vector<1x1x2x128xf32>
    %114 = vector.shape_cast %113 : vector<1x1x2x128xf32> to vector<2x128xf32>
    %115 = vector.shape_cast %112 : vector<2x128xf32> to vector<1x1x2x128xf32>
    tpu.vector_store %arg5[%c0_108, %c3_109, %c0_110, %c0_111], %115 {strides = array<i32>} : memref<1x4x2x128xf32, #tpu.memory_space<vmem>>, vector<1x1x2x128xf32>,
    return
  }
  func.func @transform_0(%arg0: i32, %arg1: i32) -> (i32, i32, i32, i32) {
    %c0_i32 = arith.constant 0 : i32
    %c0_i32_0 = arith.constant 0 : i32
    %c0_i32_1 = arith.constant 0 : i32
    return %arg0, %c0_i32, %arg1, %c0_i32_0 : i32, i32, i32, i32
  }
  func.func @transform_1(%arg0: i32, %arg1: i32) -> (i32, i32) {
    %c0_i32 = arith.constant 0 : i32
    %c0_i32_0 = arith.constant 0 : i32
    %c0_i32_1 = arith.constant 0 : i32
    return %c0_i32, %c0_i32_0 : i32, i32
  }
  func.func @transform_2(%arg0: i32, %arg1: i32) -> i32 {
    %c0_i32 = arith.constant 0 : i32
    %c0_i32_0 = arith.constant 0 : i32
    return %c0_i32 : i32
  }
  func.func @transform_3(%arg0: i32, %arg1: i32) -> (i32, i32, i32, i32) {
    %c0_i32 = arith.constant 0 : i32
    %c0_i32_0 = arith.constant 0 : i32
    %c0_i32_1 = arith.constant 0 : i32
    return %arg0, %c0_i32, %arg1, %c0_i32_0 : i32, i32, i32, i32
  }
}

</mosaic_0001>

<bundles_post_ra>
// kernel: tpu_custom_call.1
= control target key start
LH: loop header
LB: loop body
LE: loop exit
PB: predicated region body
PF: predicated region fallthrough
CT: control target
= control target key end

     0   :  { %s980_s0 = inlined_call_operand.hbm [shape: f32[2,4,2,128], index: 0, kind: input, shape index: {}]   ;;  %s981_s1 = inlined_call_operand.hbm [shape: f32[4,4], index: 1, kind: input, shape index: {}]   ;;  %s982_s2 = inlined_call_operand.vmem [shape: f32[4], index: 2, kind: input, shape index: {}]   ;;  %s983_s3 = inlined_call_operand.hbm [shape: f32[2,4,2,128], index: 3, kind: output, shape index: {}]  }
   0x1   :  { %984 = sst [smem:[#allocation14_spill]] %s981_s1 }
   0x2   :  { %8 = vsyncpa [#allocation3], 0 }
   0x3   :  { %10 = vsyncpa [#allocation3 + $0x1], 0 }
   0x4   :  { %11 = vsyncpa [#allocation5], 0 }
   0x5   :  { %12 = vsyncpa [#allocation6], 0 }
   0x6   :  { %13 = vsyncpa [#allocation4], 0 }
   0x7   :  { %15 = vsyncpa [#allocation4 + $0x1], 0  ;;  %s778_s12 = smov 0   ;;  %s780_s13 = smov 0  }
   0x8   :  { %s782_s14 = smov 0   ;;  %s784_s15 = smov 0  }
   0x9   :  { %s786_s16 = smov 0   ;;  %s788_s17 = smov 0  }
   0xa LB: > { %s459_s18 = sadd.s32 4294967295, %s750_s17   ;;  %s460_s19 = sadd.s32 4294967294, %s750_s17   ;;  %s750_s17 = sphi %s788_s17, %s21_s17   ;;  %s746_s16 = sphi %s786_s16, %s997_s16   ;;  %s742_s15 = sphi %s784_s15, %s996_s15   ;;  %s738_s14 = sphi %s782_s14, %s995_s14   ;;  %s734_s13 = sphi %s780_s13, %s994_s13   ;;  %s730_s12 = sphi %s778_s12, %s993_s12  }
   0xb   : > { %s42_s20 = sadd.s32 1, %s738_s14  ;;  %p49_p0 = scmp.ne.s32.totalorder %s738_s14, %s734_s13 }
   0xc   : > { %p50_p1 = scmp.eq.s32.totalorder %s750_s17, 0  ;;  %p55_p2 = scmp.ne.s32.totalorder %s734_s13, %s730_s12 }
   0xd   : > { %p816_p3 = scmp.eq.s32.totalorder %s459_s18, 0  ;;  %p123_p4 = scmp.eq.s32.totalorder %s459_s18, 1 }
   0xe   : > { %p820_p5 = por %p50_p1, %p49_p0  ;;  %p129_p6 = scmp.eq.s32.totalorder %s460_s19, 1 }
   0xf   : > { %p826_p7 = por %p816_p3, %p55_p2  ;;  %p830_p8 = por %p123_p4, %p49_p0 }
  0x10   : > { %p834_p9 = por %p129_p6, %p55_p2  ;;  %p461_p10 = scmp.ge.s32.totalorder %s750_s17, 1 }
  0x11   : > { %p136_p11 = scmp.lt.s32.totalorder %s750_s17, 3  ;;  %s990_s1 = sld [smem:[#allocation14_spill]] }
  0x12   : > { %p464_p13 = scmp.ge.s32.totalorder %s750_s17, 2  ;;  %p542_p0 = scmp.lt.s32.totalorder %s750_s17, 2 }
  0x13   : > { %p843_p12 = pnand %p461_p10, %p136_p11  ;;  %s158_s5 = sshll.u32 %s982_s2, 4  ;;  %s159_s5 = int_to_ptr.vmem [resolvable:$true] %s158_s5 }
  0x14   : > { %p856_p2 = pnand %p542_p0, %p820_p5  ;;  %s752_s7 = smov [#allocation7]  }
  0x15   : > { %p525_p1 = pneg %p843_p12  ;;  %s753_s8 = smov [#allocation8]  }
  0x16   : > { %s33_s9 = sadd.s32 1, %s746_s16  ;;  %s169_s10 = sand.u32 1, %s738_s14  }
  0x17   : > { %s148_s28 = sshll.u32 %s990_s1, 4  ;;  %p526_p4 = pnand %p525_p1, %p816_p3  ;;  %s149_s28 = int_to_ptr.hbm [resolvable:$true] %s148_s28 }
  0x18   : > { %p35_p6 = scmp.ge.s32.totalorder %s33_s9, 2  ;;  %s465_s11 = sshll.u32 %s169_s10, 3 }
  0x19   : > { %528 = dma.hbm_to_smem (!%p526_p4), %s149_s28, 64, %s752_s7, [#allocation5]  }
  0x1a   : > { %531 = dma.vmem_to_smem (!%p526_p4), %s159_s5, 16, %s753_s8, [#allocation6]  }
  0x1b   : > { %s511_s18 = sshll.u32 %s746_s16, 3  ;;  %s999_s9 = smov (%p35_p6, %s33_s9), 0 }
  0x1c   : > { %s179_s26 = scalar_lea.hbm %s980_s0, %s511_s18  ;;  %s37_s27 = ssub.s32 %s746_s16, %s999_s9 }
  0x1d   : > { %s180_s30 = sshll.u32 %s179_s26, 4  ;;  %p40_p5 = scmp.eq.s32.totalorder %s37_s27, 0  ;;  %s181_s30 = int_to_ptr.hbm [resolvable:$true] %s180_s30 }
  0x1e   : > { %s173_s28 = scalar_lea.vmem [#allocation2], %s465_s11  ;;  %s170_s7 = scalar_lea.sflag [#allocation3], %s169_s10 }
  0x1f   : > { %s182_s4 = sshll.u32 %s173_s28, 4  ;;  %s754_s8 = smov 32   ;;  %s183_s4 = int_to_ptr.vmem [resolvable:$true] %s182_s4 }
  0x20   : > { %s875_s5 = scalar_select %p40_p5, %s738_s14, %s42_s20  }
  0x21   : > { %s755_s1 = smov 2   ;;  %194 = sbr.rel (%p843_p12) target bundleno = 82 (0x52), region = 32 }
  0x22   : > { %535 = dma.hbm_to_vmem [thread:$0]  (!%p856_p2), %s181_s30, 128, %s183_s4, %s170_s7, %s754_s8, %s754_s8, %s755_s1  }
  0x23   : > { %s882_s18 = sand.u32 (!%p843_p12), 1, %s734_s13  }
  0x24   : > { %s469_s11 = sshll.u32 (!%p843_p12), %s882_s18, 3  ;;  %s197_s19 = scalar_lea.sflag (!%p843_p12), [#allocation3], %s882_s18 }
  0x25   : > { %s888_s20 = scalar_lea.vmem (!%p843_p12), [#allocation2], %s469_s11 }
  0x26   : > { %713 = dma.done.wait (%p826_p7), %s197_s19, 128  }
  0x27   : > { %715 = vsyncadd (%p826_p7), %s197_s19, 4294967168 }
  0x28   : > { %717 = dma.done.wait (%p816_p3), [#allocation5], 64  }
  0x29   : > { %719 = vsyncadd (%p816_p3), [#allocation5], 4294967232 }
  0x2a   : > { %721 = dma.done.wait (%p816_p3), [#allocation6], 16  }
  0x2b   : > { %723 = vsyncadd (%p816_p3), [#allocation6], 4294967280 }
  0x2c   : > { %216 = sfence }
  0x2d   : > { %s235_s1 = sld [smem:[#allocation7]]  ;;  %v236_v0 = vld [vmem:[%s888_s20] sm:$0x3]  ;;  %v474_v1 = vld [vmem:[%s888_s20 + $0x2] sm:$0x3] }
  0x2e   : > { %s473_s23 = sld [smem:[#allocation7 + $0x1]]  ;;  %v476_v3 = vld [vmem:[%s888_s20 + $0x4] sm:$0x3]  ;;  %v478_v6 = vld [vmem:[%s888_s20 + $0x6] sm:$0x3] }
  0x2f   : > { %s475_s29 = sld [smem:[#allocation7 + $0x2]]  ;;  %v262_v11 = vld [vmem:[%s888_s20] sm:$0x3]  ;;  %v481_v14 = vld [vmem:[%s888_s20 + $0x2] sm:$0x3] }
  0x30   : > { %s477_s6 = sld [smem:[#allocation7 + $0x3]]  ;;  %v483_v16 = vld [vmem:[%s888_s20 + $0x4] sm:$0x3]  ;;  %v485_v20 = vld [vmem:[%s888_s20 + $0x6] sm:$0x3] }
  0x31   : > { %s903_s10 = sld [smem:[#allocation8]]  ;;  %v286_v27 = vld [vmem:[%s888_s20] sm:$0x3]  ;;  %v490_v30 = vld [vmem:[%s888_s20 + $0x2] sm:$0x3] }
  0x32   : > { %s479_s22 = sld [smem:[#allocation7 + $0x80]]  ;;  %v492_v33 = vld [vmem:[%s888_s20 + $0x4] sm:$0x3]  ;;  %v494_v37 = vld [vmem:[%s888_s20 + $0x6] sm:$0x3] }
  0x33   : > { %v237_v2 = vstv %s235_s1  ;;  %s480_s21 = sld [smem:[#allocation7 + $0x81]]  ;;  %v310_v44 = vld [vmem:[%s888_s20] sm:$0x3]  ;;  %v499_v47 = vld [vmem:[%s888_s20 + $0x2] sm:$0x3] }
  0x34   : > { %v238_v4 = vmul.f32 %v237_v2, %v236_v0  ;;  %v242_v5 = vstv %s473_s23  ;;  %s482_s26 = sld [smem:[#allocation7 + $0x82]]  ;;  %v501_v50 = vld [vmem:[%s888_s20 + $0x4] sm:$0x3]  ;;  %v503_v54 = vld [vmem:[%s888_s20 + $0x6] sm:$0x3] }
  0x35   : > { %v243_v7 = vmul.f32 %v474_v1, %v242_v5  ;;  %v248_v8 = vstv %s475_s29  ;;  %s484_s27 = sld [smem:[#allocation7 + $0x83]] }
  0x36   : > { %v249_v9 = vmul.f32 %v476_v3, %v248_v8  ;;  %v254_v10 = vstv %s477_s6  ;;  %s909_s30 = sld [smem:[#allocation8 + $0x1]]  ;;  %s928_s6 = scalar_lea.vmem [#allocation9], %s469_s11 }
  0x37   : > { %v244_v12 = vadd.f32 %v243_v7, %v238_v4  ;;  %v255_v13 = vmul.f32 %v478_v6, %v254_v10  ;;  %s488_s28 = sld [smem:[#allocation7 + $0x100]]  ;;  %v258_v21 = vstv %s903_s10 }
  0x38   : > { %v263_v15 = vstv %s479_s22  ;;  %s913_s4 = sld [smem:[#allocation7 + $0x101]]  ;;  %s512_s22 = sshll.u32 %s742_s15, 3 }
  0x39   : > { %v250_v17 = vadd.f32 %v249_v9, %v244_v12  ;;  %v264_v18 = vmul.f32 %v263_v15, %v262_v11  ;;  %v267_v19 = vstv %s480_s21  ;;  %s491_s7 = sld [smem:[#allocation7 + $0x102]]  ;;  %s347_s15 = sshll.u32 %s928_s6, 4  ;;  %s348_s15 = int_to_ptr.vmem [resolvable:$true] %s347_s15 }
  0x3a   : > { %v268_v22 = vmul.f32 %v481_v14, %v267_v19  ;;  %v272_v23 = vstv %s482_s26  ;;  %s493_s8 = sld [smem:[#allocation7 + $0x103]] }
  0x3b   : > { %v256_v24 = vadd.f32 %v255_v13, %v250_v17  ;;  %v273_v25 = vmul.f32 %v483_v16, %v272_v23  ;;  %v277_v26 = vstv %s484_s27  ;;  %s918_s19 = sld [smem:[#allocation8 + $0x2]]  ;;  %s346_s27 = scalar_lea.hbm %s983_s3, %s512_s22 }
  0x3c   : > { %v269_v28 = vadd.f32 %v268_v22, %v264_v18  ;;  %v278_v29 = vmul.f32 %v485_v20, %v277_v26  ;;  %s497_s1 = sld [smem:[#allocation7 + $0x180]]  ;;  %v281_v38 = vstv %s909_s30  ;;  %s349_s20 = sshll.u32 %s346_s27, 4  ;;  %s350_s20 = int_to_ptr.hbm [resolvable:$true] %s349_s20 }
  0x3d   : > { %v259_v31 = vadd.f32 %v258_v21, %v256_v24  ;;  %v287_v32 = vstv %s488_s28  ;;  %s922_s23 = sld [smem:[#allocation7 + $0x181]]  ;;  %s334_s30 = scalar_lea.sflag [#allocation4], %s882_s18 }
  0x3e   : > { %v274_v34 = vadd.f32 %v273_v25, %v269_v28  ;;  %v288_v35 = vmul.f32 %v287_v32, %v286_v27  ;;  %v291_v36 = vstv %s913_s4  ;;  %s500_s29 = sld [smem:[#allocation7 + $0x182]]  ;;  %s674_s28 = sshra.s32 %s350_s20, 4  ;;  %s675_s28 = int_to_ptr.hbm [resolvable:$true] %s674_s28 }
  0x3f   : > { %260 = vst [vmem:[%s928_s6] sm:$0x3] %v259_v31  ;;  %v292_v39 = vmul.f32 %v490_v30, %v291_v36  ;;  %v296_v40 = vstv %s491_s7  ;;  %s502_s10 = sld [smem:[#allocation7 + $0x183]]  ;;  %s676_s4 = scalar_lea.hbm %s675_s28, 8 }
  0x40   : > { %v279_v41 = vadd.f32 %v278_v29, %v274_v34  ;;  %v297_v42 = vmul.f32 %v492_v33, %v296_v40  ;;  %v301_v43 = vstv %s493_s8  ;;  %s504_s11 = sld [smem:[#allocation8 + $0x3]]  ;;  %p677_p3 = scmp.ne.s32.totalorder %s675_s28, %s676_s4 }
  0x41   : > { %v293_v45 = vadd.f32 %v292_v39, %v288_v35  ;;  %v302_v46 = vmul.f32 %v494_v37, %v301_v43  ;;  %v305_v55 = vstv %s918_s19  ;;  %s680_s19 = scalar_lea.hbm %s983_s3, 16  ;;  %p681_p11 = scmp.lt.s32.totalorder %s675_s28, %s983_s3 }
  0x42   : > { %v282_v48 = vadd.f32 %v281_v38, %v279_v41  ;;  %v311_v49 = vstv %s497_s1  ;;  %p678_p7 = pnand %p677_p3, %p830_p8  ;;  %p682_p12 = scmp.lt.s32.totalorder %s680_s19, %s676_s4 }
  0x43   : > { %v298_v51 = vadd.f32 %v297_v42, %v293_v45  ;;  %v312_v52 = vmul.f32 %v311_v49, %v310_v44  ;;  %v315_v53 = vstv %s922_s23 }
  0x44   : > { %487 = vst [vmem:[%s928_s6 + $0x2] sm:$0x3] %v282_v48  ;;  %v316_v56 = vmul.f32 %v499_v47, %v315_v53  ;;  %v320_v57 = vstv %s500_s29  ;;  %p679_p10 = pneg %p678_p7  ;;  %p683_p0 = por %p682_p12, %p681_p11 }
  0x45   : > { %v303_v58 = vadd.f32 %v302_v46, %v298_v51  ;;  %v321_v59 = vmul.f32 %v501_v50, %v320_v57  ;;  %v325_v60 = vstv %s502_s10 }
  0x46   : > { %v317_v61 = vadd.f32 %v316_v56, %v312_v52  ;;  %v326_v62 = vmul.f32 %v503_v54, %v325_v60  ;;  %v329_v1 = vstv %s504_s11  ;;  %p684_p1 = pnand %p683_p0, %p679_p10 }
  0x47   : > { %v306_v63 = vadd.f32 %v305_v55, %v303_v58 }
  0x48   : > { %v322_v0 = vadd.f32 %v321_v59, %v317_v61 }
  0x49   : > { %496 = vst [vmem:[%s928_s6 + $0x4] sm:$0x3] %v306_v63 }
  0x4a   : > { %v327_v2 = vadd.f32 %v326_v62, %v322_v0 }
  0x4c   : > { %v330_v3 = vadd.f32 %v329_v1, %v327_v2 }
  0x4e   : > { %505 = vst [vmem:[%s928_s6 + $0x6] sm:$0x3] %v330_v3 }
  0x4f   : > { %687 = shalt.err (!%p684_p1)
}
  0x50   : > { %s756_s18 = smov 32   ;;  %s757_s29 = smov 2  }
  0x51   : > { %523 = dma.vmem_to_hbm [thread:$0]  (%p830_p8), %s348_s15, 128, %s350_s20, %s334_s30, %s756_s18, %s756_s18, %s757_s29  }
  0x52 PF: > { %s364_s6 = sand.u32 1, %s730_s12   ;;  %p537_p2 = pnand %p464_p13, %p834_p9 }
  0x53   : > { %s365_s10 = scalar_lea.sflag [#allocation4], %s364_s6 }
  0x54   : > { %p538_p4 = pneg %p537_p2 }
  0x56   : > { %725 = dma.done.wait (%p538_p4), %s365_s10, 128  }
  0x57   : > { %727 = vsyncadd (%p538_p4), %s365_s10, 4294967168  ;;  %s21_s17 = sadd.s32 1, %s750_s17   ;;  %s993_s12 = smov %s734_s13 }
  0x58   : > { %p18_p6 = scmp.ge.s32.totalorder %s21_s17, 4   ;;  %s994_s13 = smov %s738_s14 }
  0x59   : > { %s995_s14 = smov %s875_s5  ;;  %s996_s15 = smov %s746_s16 }
  0x5a   : > { %s997_s16 = smov %s999_s9  ;;  %20 = sbr.rel (!%p18_p6) target bundleno = 10 (0xa), region = 93 }
  0x5f   :  { %371 = vsyncpa [#allocation3], 1 }
  0x60   :  { %373 = vsyncpa [#allocation3 + $0x1], 1 }
  0x61   :  { %374 = vsyncpa [#allocation4], 1 }
  0x62   :  { %376 = vsyncpa [#allocation4 + $0x1], 1 }
  0x63   :  { %377 = vsyncpa [#allocation5], 1 }
  0x64   :  { %379 = vsyncpa [#allocation5 + $0x1], 1 }
  0x65   :  { %380 = vsyncpa [#allocation6], 1 }
  0x66   :  { %382 = vsyncpa [#allocation6 + $0x1], 1 }

</bundles_post_ra>
